<compile_context>
chip_gen: v7x
topology: tpu7x:2x2x1
jax: 0.10.0
libtpu: 0.0.40
codegen_flags: <defaults>
</compile_context>

<pallas_src>
import functools

import jax
import jax.numpy as jnp
from jax.experimental import pallas as pl
from jax.experimental.pallas import tpu as pltpu


# ---------------------------------------------------------------------------
# One-time probe: pltpu.roll rotation convention on this backend/device.
# ---------------------------------------------------------------------------
@functools.lru_cache(maxsize=None)
def _roll_matches_jnp_roll(backend_key) -> bool:
    """True iff pltpu.roll(x, s, ax) behaves like jnp.roll(x, s, ax)."""
    del backend_key  # cache key only

    def probe(x_ref, o_ref):
        o_ref[...] = pltpu.roll(x_ref[...], 1, 1)

    x = jax.lax.broadcasted_iota(jnp.float32, (8, 128), 1)
    out = jax.jit(pl.pallas_call(
        probe, out_shape=jax.ShapeDtypeStruct((8, 128), jnp.float32)))(x)
    v = float(out[0, 0])
    if v == 127.0:   # jnp.roll convention: element 127 wraps to position 0
        return True
    if v == 1.0:     # opposite convention
        return False
    raise RuntimeError(f"Unexpected pltpu.roll probe value: {v}")


def _backend_key():
    dev = jax.devices()[0]
    return (jax.default_backend(), getattr(dev, "device_kind", "unknown"))


# ---------------------------------------------------------------------------
# Kernel: nb images per grid step, everything lane-dense (C, nb*HW).
# ---------------------------------------------------------------------------
def rcab_kernel(x_ref, w1_ref, w2_ref, w3_ref, sm_ref, o_ref, patches_ref,
                *, width, hw, nb, hidden, roll_like_jnp):
    C = o_ref.shape[1]
    N = nb * hw
    W = width

    # Per-image boundary-validity masks, shape (1, N).  Coordinates are taken
    # modulo HW so the lane rotate below never mixes adjacent images and every
    # circular-wrap position is zeroed -> exact zero-padded (padding=1) conv.
    col = jax.lax.broadcasted_iota(jnp.int32, (1, N), 1)
    p = col % hw                     # position inside its own image
    wpos = p % W                     # column inside the image row
    row_ok = {-1: p >= W, 0: None, 1: p < hw - W}
    colm_ok = {-1: wpos > 0, 0: None, 1: wpos < W - 1}

    offsets = [(dy, dx) for dy in (-1, 0, 1) for dx in (-1, 0, 1)]

    def tap(h, dy, dx):
        # t[:, q] = h[:, q + dy*W + dx] inside the image, 0 outside.
        s = dy * W + dx
        if s == 0:
            t = h
        else:
            shift = (-s if roll_like_jnp else s) % N
            t = pltpu.roll(h, shift, 1)          # XLU lane rotate (free slot)
        m = None
        for ok in (row_ok[dy], colm_ok[dx]):
            if ok is not None:
                m = ok if m is None else (m & ok)
        return t if m is None else jnp.where(m, t, 0.0)

    def conv3x3_relu(h, w_ref, bias):
        # im2col: each masked tap is cast to bf16 and stored straight into the
        # persistent (9C, N) VMEM scratch (bounds vreg live ranges -- no 9-tap
        # concat), then one MXU matmul against the bf16 (C, 9C) weight with
        # f32 accumulation.  Elementwise math stays f32 (v5e has no bf16 VPU).
        for t_idx, (dy, dx) in enumerate(offsets):
            patches_ref[t_idx * C:(t_idx + 1) * C, :] = (
                tap(h, dy, dx).astype(jnp.bfloat16))
        y = jnp.dot(w_ref[...], patches_ref[...],
                    preferred_element_type=jnp.float32)          # (C, N) f32
        return jnp.maximum(y + bias, 0.0)

    h = conv3x3_relu(x_ref[0], w1_ref, sm_ref[:, 0:1])
    h = conv3x3_relu(h, w2_ref, sm_ref[:, 1:2])
    h = conv3x3_relu(h, w3_ref, sm_ref[:, 2:3])

    # ---- squeeze-excite channel attention (per image segment) -------------
    fb2 = sm_ref[:, 3:4]                                  # (C, 1)
    fw1_t = sm_ref[:, 4:4 + hidden]                       # (C, hidden)
    fw2 = sm_ref[:, 4 + hidden:4 + 2 * hidden]            # (C, hidden)
    fb1 = sm_ref[0:1, 4 + 2 * hidden:4 + 3 * hidden]      # (1, hidden)

    # Global max pool per image (lane-aligned 256-wide segments).
    pooled_cols = [jnp.max(h[:, i * hw:(i + 1) * hw], axis=1, keepdims=True)
                   for i in range(nb)]
    pooled = (pooled_cols[0] if nb == 1
              else jnp.concatenate(pooled_cols, axis=1))          # (C, nb)

    # FC1 -> ReLU -> FC2 on the VPU (hidden is tiny; no degenerate MXU push).
    contrib = None
    for j in range(hidden):
        zj = jnp.sum(fw1_t[:, j:j + 1] * pooled, axis=0, keepdims=True)  # (1, nb)
        zj = jnp.maximum(zj + fb1[:, j:j + 1], 0.0)
        cj = fw2[:, j:j + 1] * zj                                        # (C, nb)
        contrib = cj if contrib is None else contrib + cj
    attn = jax.nn.sigmoid(contrib + fb2)                                 # (C, nb)

    # channel attention + residual, lane-dense 256-wide stores per image.
    for i in range(nb):
        a, b = i * hw, (i + 1) * hw
        o_ref[0, :, a:b] = (h[:, a:b] * attn[:, i:i + 1]
                            + x_ref[0, :, a:b]).astype(o_ref.dtype)


# ---------------------------------------------------------------------------
# Wrapper: PyTorch-layout params, NCHW in / NCHW out.
# ---------------------------------------------------------------------------
def _pick_images_per_step(B, HW):
    # Stack as many images as possible along the lane axis (cap the lane
    # extent at ~2048); nb must divide B.
    nb = max(1, min(B, 2048 // max(HW, 1)))
    while B % nb:
        nb -= 1
    return nb


def rcab_forward_nchw(x_nchw, params):
    """RCAB forward. x_nchw: (B, C, H, W) f32 -> (B, C, H, W) f32."""
    return _rcab_forward_impl(x_nchw, params,
                              _roll_matches_jnp_roll(_backend_key()))


@functools.partial(jax.jit, static_argnums=(2,))
def _rcab_forward_impl(x_nchw, params, roll_like_jnp):
    (w1, b1, w2, b2, w3, b3, fw1, fb1, fw2, fb2) = params   # PyTorch layouts
    B, C, H, W = x_nchw.shape
    HW = H * W
    hidden = fw1.shape[0]

    # Trace-time parameter re-layouts (negligible XLA work).
    def conv_w(w):   # OIHW (C, C, 3, 3) -> (C_out, 9*C_in) bf16, tap-major
        return (jnp.transpose(w, (0, 2, 3, 1))
                .reshape(C, 9 * C).astype(jnp.bfloat16))

    wm1, wm2, wm3 = conv_w(w1), conv_w(w2), conv_w(w3)

    # Pack ALL tiny per-channel params into one lane-padded f32 slab:
    #   col 0..2: conv biases, col 3: fb2, cols 4..: fw1^T | fw2 | fb1(row 0)
    sm_width = max(128, pl.cdiv(4 + 3 * hidden, 128) * 128)
    sm = jnp.zeros((C, sm_width), jnp.float32)
    sm = sm.at[:, 0].set(b1).at[:, 1].set(b2).at[:, 2].set(b3)
    sm = sm.at[:, 3].set(fb2)
    sm = sm.at[:, 4:4 + hidden].set(fw1.T)
    sm = sm.at[:, 4 + hidden:4 + 2 * hidden].set(fw2)
    sm = sm.at[0, 4 + 2 * hidden:4 + 3 * hidden].set(fb1)

    # Batch chunking: nb images stacked along lanes per grid step.
    nb = _pick_images_per_step(B, HW)
    G = B // nb
    N = nb * HW
    x = (x_nchw.reshape(G, nb, C, HW)
         .transpose(0, 2, 1, 3)              # images along the lane axis
         .reshape(G, C, N))

    kernel = functools.partial(rcab_kernel, width=W, hw=HW, nb=nb,
                               hidden=hidden, roll_like_jnp=roll_like_jnp)
    inv = lambda shape: pl.BlockSpec(shape, lambda g: (0,) * len(shape))

    out = pl.pallas_call(
        kernel,
        out_shape=jax.ShapeDtypeStruct((G, C, N), jnp.float32),
        grid_spec=pltpu.PrefetchScalarGridSpec(
            num_scalar_prefetch=0,
            grid=(G,),
            in_specs=[
                pl.BlockSpec((1, C, N), lambda g: (g, 0, 0)),   # x chunk
                inv((C, 9 * C)), inv((C, 9 * C)), inv((C, 9 * C)),  # conv w
                inv((C, sm_width)),                              # packed smalls
            ],
            out_specs=pl.BlockSpec((1, C, N), lambda g: (g, 0, 0)),
            scratch_shapes=[pltpu.VMEM((9 * C, N), jnp.bfloat16)],  # im2col
        ),
        compiler_params=pltpu.CompilerParams(
            dimension_semantics=("parallel",)),   # shard chunks over TCs
        # Scaling knob for large C: add pipeline_mode=pl.Buffered(1) on the
        # invariant weight specs + vmem_limit_bytes here (v7x: 64 MiB VMEM).
    )(x, wm1, wm2, wm3, sm)

    return (out.reshape(G, C, nb, HW)
            .transpose(0, 2, 1, 3)
            .reshape(B, C, H, W))


# ---------------------------------------------------------------------------
# Deterministic params (PyTorch layouts) and a pure-JAX reference.
# ---------------------------------------------------------------------------
def make_params(key, in_channels, reduction_ratio):
    C = in_channels
    hidden = C // reduction_ratio
    keys = jax.random.split(key, 10)
    scale = 0.1

    def r(k, shape):
        return (scale * jax.random.normal(k, shape)).astype(jnp.float32)

    w1 = r(keys[0], (C, C, 3, 3)); b1 = r(keys[1], (C,))        # Conv2d: OIHW
    w2 = r(keys[2], (C, C, 3, 3)); b2 = r(keys[3], (C,))
    w3 = r(keys[4], (C, C, 3, 3)); b3 = r(keys[5], (C,))
    fw1 = r(keys[6], (hidden, C)); fb1 = r(keys[7], (hidden,))  # Linear: (out,in)
    fw2 = r(keys[8], (C, hidden)); fb2 = r(keys[9], (C,))
    return (w1, b1, w2, b2, w3, b3, fw1, fb1, fw2, fb2)


def reference_forward_nchw(x, params):
    """Pure-JAX reference of the PyTorch forward at HIGHEST precision."""
    (w1, b1, w2, b2, w3, b3, fw1, fb1, fw2, fb2) = params
    dn = jax.lax.conv_dimension_numbers(x.shape, w1.shape,
                                        ("NCHW", "OIHW", "NCHW"))
    hp = jax.lax.Precision.HIGHEST

    def conv(h, w, b):
        y = jax.lax.conv_general_dilated(
            h, w, window_strides=(1, 1), padding="SAME",
            dimension_numbers=dn, precision=hp)
        return y + b.reshape(1, -1, 1, 1)

    h = jax.nn.relu(conv(x, w1, b1))
    h = jax.nn.relu(conv(h, w2, b2))
    h = jax.nn.relu(conv(h, w3, b3))
    pooled = jnp.max(h, axis=(2, 3))                                  # (B, C)
    z = jax.nn.relu(jnp.dot(pooled, fw1.T, precision=hp) + fb1)
    attn = jax.nn.sigmoid(jnp.dot(z, fw2.T, precision=hp) + fb2)      # (B, C)
    return h * attn[:, :, None, None] + x


if __name__ == "__main__":
    B, C, H, W = 2, 32, 16, 16          # hidden = C // 16 = 2
    reduction_ratio = 16

    key = jax.random.PRNGKey(0)
    kx, kp = jax.random.split(key)
    x = jax.random.normal(kx, (B, C, H, W), dtype=jnp.float32)
    params = make_params(kp, C, reduction_ratio)

    out = jax.block_until_ready(rcab_forward_nchw(x, params))
    ref = jax.block_until_ready(reference_forward_nchw(x, params))

    assert out.shape == (B, C, H, W)
    # Contract: the kernel's conv matmuls use bf16 operands with f32
    # accumulation (MXU-native, per the perf review); the reference runs at
    # HIGHEST precision, so the tolerance covers bf16 product rounding
    # accumulated through three K=288 convolutions.
    max_err = float(jnp.max(jnp.abs(out - ref)))
    assert jnp.allclose(out, ref, atol=1.5e-1, rtol=5e-2), max_err
    print("KERNEL_OK")
</pallas_src>

<mosaic_0001>
module attributes {stable_mosaic.version = 11 : i64} {
  func.func @probe(%arg0: memref<8x128xf32, #tpu.memory_space<vmem>>, %arg1: memref<8x128xf32, #tpu.memory_space<vmem>>) attributes {dimension_semantics = [], scalar_prefetch = 0 : i64, scratch_operands = 0 : i64, tpu.core_type = #tpu.core_type<tc>} {
    %c0 = arith.constant 0 : index
    %c0_0 = arith.constant 0 : index
    %0 = vector.load %arg0[%c0, %c0_0] : memref<8x128xf32, #tpu.memory_space<vmem>>, vector<8x128xf32>
    %c1_i32 = arith.constant 1 : i32
    %1 = tpu.dynamic_rotate %0 by %c1_i32 dim 1 : vector<8x128xf32>, i32 -> vector<8x128xf32>
    %c0_1 = arith.constant 0 : index
    %c0_2 = arith.constant 0 : index
    %2 = vector.load %arg1[%c0_1, %c0_2] : memref<8x128xf32, #tpu.memory_space<vmem>>, vector<8x128xf32>
    tpu.vector_store %arg1[%c0_1, %c0_2], %1 {strides = array<i32>} : memref<8x128xf32, #tpu.memory_space<vmem>>, vector<8x128xf32>,
    return
  }
}

</mosaic_0001>

<bundles_post_ra>
// kernel: tpu_custom_call.1
= control target key start
LH: loop header
LB: loop body
LE: loop exit
PB: predicated region body
PF: predicated region fallthrough
CT: control target
= control target key end

     0   :  { %6 = vsyncpa [#allocation3], 0  ;;  %s128_s0 = inlined_call_operand.hbm [shape: f32[8,128], index: 0, kind: input, shape index: {}]   ;;  %s129_s1 = inlined_call_operand.hbm [shape: f32[8,128], index: 1, kind: output, shape index: {}]  }
   0x1   :  { %7 = vsyncpa [#allocation4], 0  ;;  %s91_s6 = smov [#allocation2]   ;;  %s43_s10 = scalar_lea.hbm %s128_s0, 128 }
   0x2   :  { %s14_s7 = sshll.u32 %s91_s6, 4  ;;  %p44_p0 = scmp.ne.s32.totalorder %s128_s0, %s43_s10  ;;  %s15_s7 = int_to_ptr.vmem [resolvable:$true] %s14_s7 }
   0x3   :  { %p47_p1 = scmp.lt.u32.totalorder %s43_s10, %s128_s0 }
   0x5   :  { %p49_p2 = pnand %p47_p1, %p44_p0 }
   0x7   :  { %52 = shalt.err (!%p49_p2)
}
   0x8   :  { %s53_s15 = scalar_lea.vmem %s15_s7, 128  ;;  %p58_p4 = scmp.lt.s32.totalorder %s15_s7, %s15_s7 }
   0x9   :  { %p54_p3 = scmp.ne.s32.totalorder %s15_s7, %s53_s15  ;;  %p59_p5 = scmp.lt.s32.totalorder %s53_s15, %s53_s15 }
   0xb   :  { %p60_p6 = por %p59_p5, %p58_p4 }
   0xd   :  { %p61_p7 = pnand %p60_p6, %p54_p3 }
   0xf   :  { %64 = shalt.err (!%p61_p7)
}
  0x10   :  { %17 = dma.hbm_to_vmem [thread:$0]  %s128_s0, 128, %s15_s7, [#allocation3]  }
  0x11   :  { %87 = dma.done.wait [#allocation3], 128  }
  0x12   :  { %88 = vsyncadd [#allocation3], 4294967168  ;;  %v21_v0 = vld [vmem:[#allocation2] sm:$0xff]  ;;  %s92_s18 = smov 1   ;;  %s93_s19 = smov [#allocation5]  }
  0x13   :  { %22 = vrot.lane.b32.xlu0 %v21_v0, %s92_s18  ;;  %s31_s20 = sshll.u32 %s93_s19, 4  ;;  %s32_s20 = int_to_ptr.vmem [resolvable:$true] %s31_s20 }
  0x14   :  { %s65_s21 = scalar_lea.vmem %s32_s20, 128  ;;  %p70_p9 = scmp.lt.s32.totalorder %s32_s20, %s32_s20 }
  0x15   :  { %p66_p8 = scmp.ne.s32.totalorder %s32_s20, %s65_s21  ;;  %p71_p10 = scmp.lt.s32.totalorder %s65_s21, %s65_s21 }
  0x17   :  { %p72_p11 = por %p71_p10, %p70_p9 }
  0x19   :  { %p73_p12 = pnand %p72_p11, %p66_p8 }
  0x85   :  { %v23_v1 = vpop.permute.xlu0 %22 }
  0x86   :  { %24 = vst [vmem:[#allocation5] sm:$0xff] %v23_v1 }
  0x87   :  { %76 = shalt.err (!%p73_p12)
}
  0x88   :  { %s77_s0 = scalar_lea.hbm %s129_s1, 128 }
  0x89   :  { %p78_p13 = scmp.ne.s32.totalorder %s129_s1, %s77_s0  ;;  %p81_p0 = scmp.lt.u32.totalorder %s77_s0, %s129_s1 }
  0x8b   :  { %p83_p1 = pnand %p81_p0, %p78_p13 }
  0x8d   :  { %86 = shalt.err (!%p83_p1)
}
  0x8e   :  { %34 = dma.vmem_to_hbm [thread:$0]  %s32_s20, 128, %s129_s1, [#allocation4]  }
  0x8f   :  { %89 = dma.done.wait [#allocation4], 128  }
  0x90   :  { %90 = vsyncadd [#allocation4], 4294967168 }
  0x91   :  { %38 = vsyncpa [#allocation3], 1 }
  0x92   :  { %39 = vsyncpa [#allocation4], 1 }

</bundles_post_ra>
